<compile_context>
chip_gen: v5e
topology: v5e:2x2
jax: 0.10.0
libtpu: 0.0.40
codegen_flags: <defaults>
</compile_context>

<pallas_src>
import functools

import jax
import jax.numpy as jnp
from jax.experimental import pallas as pl
from jax.experimental.pallas import tpu as pltpu


def _round_up(a: int, b: int) -> int:
    return ((a + b - 1) // b) * b


@functools.lru_cache(maxsize=1)
def _vmem_capacity_bytes() -> int:
    try:
        return int(pltpu.get_tpu_info().vmem_capacity_bytes)
    except Exception:
        return 64 * 1024 * 1024  # conservative (v7x per-TC size)


def _choose_tf(d_ff: int, tf_req: int):
    """Pick a d_ff tile: returns (tf_eff, d_ff_pad) with d_ff_pad % tf_eff == 0."""
    if d_ff <= tf_req:
        return d_ff, d_ff                       # weights resident, single k step
    # Largest multiple of 128 <= tf_req that divides d_ff.
    cand = (min(tf_req, d_ff) // 128) * 128
    while cand >= 128:
        if d_ff % cand == 0:
            return cand, d_ff
        cand -= 128
    # No aligned divisor: zero-pad d_ff up to a multiple of the tile (exact).
    tf_eff = max(128, (tf_req // 128) * 128)
    return tf_eff, _round_up(d_ff, tf_eff)


def _vmem_need(tm_e, tf_e, d_model, xb, wb):
    return (4 * tm_e * d_model * xb             # x + out tiles (double-buffered)
            + 4 * d_model * tf_e * wb           # W1 + W2 tiles (double-buffered)
            + 2 * (tf_e + d_model) * wb         # b1 + b2 tiles
            + tm_e * d_model * (wb + 4)         # xn (weight dtype) + f32 acc
            + tm_e * tf_e * 4)                  # h intermediate


def _residual_ffn_kernel(x_ref, w1_ref, b1_ref, w2_ref, b2_ref,
                         alpha_ref, beta_ref, o_ref,
                         xn_ref, acc_ref, *, eps, n_feat):
    # x_ref:   (tm, d_model)             input token tile (also the residual)
    # w1_ref:  (d_model, tf), b1_ref: (1, tf)
    # w2_ref:  (tf, d_model), b2_ref: (1, d_model)
    # alpha_ref/beta_ref: (1,) f32 scalars in SMEM (LayerNormalization params)
    # o_ref:   (tm, d_model)
    # xn_ref:  (tm, d_model) weight-dtype scratch -- cached LayerNorm(x)
    # acc_ref: (tm, d_model) f32 scratch          -- x + b2 + sum_k h_k @ W2_k
    k = pl.program_id(1)

    @pl.when(k == 0)
    def _():
        x = x_ref[...].astype(jnp.float32)
        mean = jnp.mean(x, axis=-1, keepdims=True)
        centered = x - mean
        # torch .std() default: unbiased (ddof=1); normalize by (std + eps).
        var = jnp.sum(centered * centered, axis=-1, keepdims=True) / (n_feat - 1)
        inv = pl.reciprocal(jnp.sqrt(var) + eps)          # (tm, 1) column only
        xn = alpha_ref[0] * centered * inv + beta_ref[0]
        xn_ref[...] = xn.astype(xn_ref.dtype)             # cache in weight dtype
        # Fold residual + b2 into the accumulator init: epilogue is just a cast.
        acc_ref[...] = x + b2_ref[...].astype(jnp.float32)

    # First matmul over this d_ff tile + bias + ReLU (f32 accumulation on MXU).
    h = jnp.dot(xn_ref[...], w1_ref[...], preferred_element_type=jnp.float32)
    h = jnp.maximum(h + b1_ref[...], 0.0)

    # Second matmul: accumulate this d_ff tile's contribution.
    acc_ref[...] += jnp.dot(h.astype(w2_ref.dtype), w2_ref[...],
                            preferred_element_type=jnp.float32)

    @pl.when(k == pl.num_programs(1) - 1)
    def _():
        # dropout = identity (eval mode); x and b2 were already folded in.
        o_ref[...] = acc_ref[...].astype(o_ref.dtype)


@functools.partial(jax.jit, static_argnames=("eps", "tm", "tf"))
def residual_connection_ffn(x, w1, b1, w2, b2, alpha, beta, *,
                            eps=1e-6, tm=512, tf=None):
    """ResidualConnection with an FFN sublayer.

    x: [batch, seq, d_model] -> [batch, seq, d_model]
    Computes x + relu(LayerNorm(x) @ W1 + b1) @ W2 + b2 (dropout = identity).
    """
    batch, seq, d_model = x.shape
    d_ff = w1.shape[1]
    m = batch * seq

    xb = jnp.dtype(x.dtype).itemsize
    wb = jnp.dtype(w1.dtype).itemsize
    mult = 16 if xb == 2 else 8          # bf16 packs 2 rows per sublane

    vmem_cap = _vmem_capacity_bytes()
    budget = int(vmem_cap * 0.7)         # headroom for compiler-internal scratch

    # Token tile: big tm is the main lever (W1/W2 are re-streamed once per
    # token tile, so arithmetic intensity ~ tm FLOP per weight byte).
    tm_eff = min(_round_up(tm, mult), _round_up(m, mult))

    # d_ff tile: keep whole W1/W2 resident when small (grid-invariant weight
    # index_maps -> DMA'd once for the entire kernel), else stream d_ff tiles.
    if tf is None:
        resident_bytes = 4 * d_model * d_ff * wb
        tf_req = d_ff if resident_bytes <= min(budget // 2, 32 * 1024 * 1024) else 512
    else:
        tf_req = tf
    tf_eff, d_ff_pad = _choose_tf(d_ff, tf_req)

    # Shrink tiles until the working set fits per-core VMEM
    # (64 MiB/TC on v7x, 128 MiB on v5e/v6e).
    while _vmem_need(tm_eff, tf_eff, d_model, xb, wb) > budget:
        if tm_eff > 256:
            tm_eff = max(mult, _round_up(tm_eff // 2, mult))
        elif tf_eff > 128:
            tf_eff, d_ff_pad = _choose_tf(d_ff, max(128, tf_eff // 2))
        elif tm_eff > mult:
            tm_eff = max(mult, _round_up(tm_eff // 2, mult))
        else:
            break

    x2d = x.reshape(m, d_model)
    b1_2d = b1.reshape(1, d_ff)
    b2_2d = b2.reshape(1, d_model)
    if d_ff_pad != d_ff:
        # Zero padding is exact: relu(0 + 0) = 0 hidden cols, zero W2 rows.
        w1 = jnp.pad(w1, ((0, 0), (0, d_ff_pad - d_ff)))
        b1_2d = jnp.pad(b1_2d, ((0, 0), (0, d_ff_pad - d_ff)))
        w2 = jnp.pad(w2, ((0, d_ff_pad - d_ff), (0, 0)))
    alpha1 = alpha.reshape(1).astype(jnp.float32)
    beta1 = beta.reshape(1).astype(jnp.float32)

    # No host-side pad/slice of x: Pallas masks the ragged last token block
    # (every row is independent in LN/FFN, OOB output rows are never written).
    grid = (pl.cdiv(m, tm_eff), d_ff_pad // tf_eff)

    vmem_limit = max(32 * 1024 * 1024,
                     min(int(_vmem_need(tm_eff, tf_eff, d_model, xb, wb) * 1.3),
                         budget))

    kernel = functools.partial(_residual_ffn_kernel, eps=eps, n_feat=d_model)

    out2d = pl.pallas_call(
        kernel,
        out_shape=jax.ShapeDtypeStruct((m, d_model), x.dtype),
        grid_spec=pltpu.PrefetchScalarGridSpec(
            num_scalar_prefetch=0,
            grid=grid,
            in_specs=[
                pl.BlockSpec((tm_eff, d_model), lambda i, k: (i, 0)),   # x
                pl.BlockSpec((d_model, tf_eff), lambda i, k: (0, k)),   # W1
                pl.BlockSpec((1, tf_eff), lambda i, k: (0, k)),         # b1
                pl.BlockSpec((tf_eff, d_model), lambda i, k: (k, 0)),   # W2
                pl.BlockSpec((1, d_model), lambda i, k: (0, 0)),        # b2
                pl.BlockSpec(memory_space=pltpu.MemorySpace.SMEM),      # LN alpha
                pl.BlockSpec(memory_space=pltpu.MemorySpace.SMEM),      # LN bias
            ],
            out_specs=pl.BlockSpec((tm_eff, d_model), lambda i, k: (i, 0)),
            scratch_shapes=[
                pltpu.VMEM((tm_eff, d_model), w1.dtype),      # cached LayerNorm(x)
                pltpu.VMEM((tm_eff, d_model), jnp.float32),   # f32 accumulator
            ],
        ),
        compiler_params=pltpu.CompilerParams(
            dimension_semantics=("parallel", "arbitrary"),
            vmem_limit_bytes=vmem_limit,
        ),
    )(x2d, w1, b1_2d, w2, b2_2d, alpha1, beta1)

    return out2d.reshape(batch, seq, d_model)


def _init_params(key, d_model, d_ff, dtype=jnp.float32):
    """nn.Linear-style U(-1/sqrt(fan_in), 1/sqrt(fan_in)) init.

    Weights are stored as (in_features, out_features) so the kernel does x @ W.
    """
    k1, k2, k3, k4 = jax.random.split(key, 4)
    bound1 = 1.0 / (d_model ** 0.5)
    bound2 = 1.0 / (d_ff ** 0.5)
    w1 = jax.random.uniform(k1, (d_model, d_ff), dtype, -bound1, bound1)
    b1 = jax.random.uniform(k2, (d_ff,), dtype, -bound1, bound1)
    w2 = jax.random.uniform(k3, (d_ff, d_model), dtype, -bound2, bound2)
    b2 = jax.random.uniform(k4, (d_model,), dtype, -bound2, bound2)
    return w1, b1, w2, b2


if __name__ == "__main__":
    batch, seq, d_model, d_ff = 2, 8, 128, 256
    eps = 1e-6

    key = jax.random.PRNGKey(0)
    kx, kx2, kp = jax.random.split(key, 3)
    x = jax.random.normal(kx, (batch, seq, d_model), dtype=jnp.float32)
    w1, b1, w2, b2 = _init_params(kp, d_model, d_ff)
    alpha = jnp.ones((1,), jnp.float32)    # LayerNormalization.alpha
    beta = jnp.zeros((1,), jnp.float32)    # LayerNormalization.bias

    # Pure-JAX reference with identical semantics (unbiased std, std + eps).
    def ref_fn(xx):
        mean = xx.mean(axis=-1, keepdims=True)
        std = jnp.std(xx, axis=-1, keepdims=True, ddof=1)
        xn = alpha * (xx - mean) / (std + eps) + beta
        return xx + (jnp.maximum(xn @ w1 + b1, 0.0) @ w2 + b2)

    # 1) Default config: W1+W2 fit in VMEM -> resident weights, single d_ff step.
    out = jax.block_until_ready(
        residual_connection_ffn(x, w1, b1, w2, b2, alpha, beta, eps=eps))
    assert out.shape == (batch, seq, d_model)
    assert jnp.allclose(out, ref_fn(x), atol=1e-3, rtol=1e-3)

    # 2) Forced d_ff tiling (tf=128 -> 2-step accumulation) with a ragged
    #    token count (m = 18, tm = 8 -> last block only partially valid).
    x2 = jax.random.normal(kx2, (2, 9, d_model), dtype=jnp.float32)
    out2 = jax.block_until_ready(
        residual_connection_ffn(x2, w1, b1, w2, b2, alpha, beta,
                                eps=eps, tm=8, tf=128))
    assert out2.shape == (2, 9, d_model)
    assert jnp.allclose(out2, ref_fn(x2), atol=1e-3, rtol=1e-3)

    print("KERNEL_OK")
</pallas_src>

<mosaic_0001>
module attributes {stable_mosaic.version = 11 : i64} {
  func.func @_residual_ffn_kernel(%arg0: i32, %arg1: i32, %arg2: memref<16x128xf32, #tpu.memory_space<vmem>>, %arg3: memref<128x256xf32, #tpu.memory_space<vmem>>, %arg4: memref<1x256xf32, #tpu.memory_space<vmem>>, %arg5: memref<256x128xf32, #tpu.memory_space<vmem>>, %arg6: memref<1x128xf32, #tpu.memory_space<vmem>>, %arg7: memref<1xf32, #tpu.memory_space<smem>>, %arg8: memref<1xf32, #tpu.memory_space<smem>>, %arg9: memref<16x128xf32, #tpu.memory_space<vmem>>, %arg10: memref<16x128xf32, #tpu.memory_space<vmem>>, %arg11: memref<16x128xf32, #tpu.memory_space<vmem>>) attributes {dimension_semantics = [#tpu.dimension_semantics<parallel>, #tpu.dimension_semantics<arbitrary>], iteration_bounds = array<i64: 1, 1>, scalar_prefetch = 0 : i64, scratch_operands = 2 : i64, tpu.core_type = #tpu.core_type<tc>, window_params = [{transform_indices = @transform_0, window_bounds = array<i64: 16, 128>}, {transform_indices = @transform_1, window_bounds = array<i64: 128, 256>}, {transform_indices = @transform_2, window_bounds = array<i64: 1, 256>}, {transform_indices = @transform_3, window_bounds = array<i64: 256, 128>}, {pipeline_mode = #tpu.pipeline_mode<synchronous>, transform_indices = @transform_4, window_bounds = array<i64: 1, 128>}, {transform_indices = @transform_5, window_bounds = array<i64: 1>}, {transform_indices = @transform_6, window_bounds = array<i64: 1>}, {transform_indices = @transform_7, window_bounds = array<i64: 16, 128>}]} {
    %c0_i32 = arith.constant 0 : i32
    %0 = arith.cmpi eq, %arg1, %c0_i32 : i32
    %1 = arith.extui %0 : i1 to i32
    %c0_i32_0 = arith.constant 0 : i32
    %2 = arith.cmpi ne, %1, %c0_i32_0 : i32
    scf.if %2 {
      %c0_16 = arith.constant 0 : index
      %c0_17 = arith.constant 0 : index
      %19 = vector.load %arg2[%c0_16, %c0_17] : memref<16x128xf32, #tpu.memory_space<vmem>>, vector<16x128xf32>
      %cst_18 = arith.constant dense<0.000000e+00> : vector<16xf32>
      %20 = vector.multi_reduction <add>, %19, %cst_18 [1] : vector<16x128xf32> to vector<16xf32>
      %21 = vector.shape_cast %20 : vector<16xf32> to vector<16x1xf32>
      %cst_19 = arith.constant 1.280000e+02 : f32
      %22 = vector.broadcast %cst_19 : f32 to vector<16x1xf32>
      %23 = arith.divf %21, %22 : vector<16x1xf32>
      %24 = vector.broadcast %23 : vector<16x1xf32> to vector<16x128xf32>
      %25 = arith.subf %19, %24 : vector<16x128xf32>
      %26 = arith.mulf %25, %25 : vector<16x128xf32>
      %cst_20 = arith.constant dense<0.000000e+00> : vector<16xf32>
      %27 = vector.multi_reduction <add>, %26, %cst_20 [1] : vector<16x128xf32> to vector<16xf32>
      %28 = vector.shape_cast %27 : vector<16xf32> to vector<16x1xf32>
      %cst_21 = arith.constant 1.270000e+02 : f32
      %29 = vector.broadcast %cst_21 : f32 to vector<16x1xf32>
      %30 = arith.divf %28, %29 : vector<16x1xf32>
      %31 = math.sqrt %30 : vector<16x1xf32>
      %cst_22 = arith.constant 9.99999997E-7 : f32
      %32 = vector.broadcast %cst_22 : f32 to vector<16x1xf32>
      %33 = arith.addf %31, %32 : vector<16x1xf32>
      %34 = tpu.reciprocal %33 : vector<16x1xf32> -> vector<16x1xf32>
      %c0_23 = arith.constant 0 : index
      %35 = memref.load %arg7[%c0_23] : memref<1xf32, #tpu.memory_space<smem>>
      %36 = vector.broadcast %35 : f32 to vector<16x128xf32>
      %37 = arith.mulf %36, %25 : vector<16x128xf32>
      %38 = vector.broadcast %34 : vector<16x1xf32> to vector<16x128xf32>
      %39 = arith.mulf %37, %38 : vector<16x128xf32>
      %c0_24 = arith.constant 0 : index
      %40 = memref.load %arg8[%c0_24] : memref<1xf32, #tpu.memory_space<smem>>
      %41 = vector.broadcast %40 : f32 to vector<16x128xf32>
      %42 = arith.addf %39, %41 : vector<16x128xf32>
      %c0_25 = arith.constant 0 : index
      %c0_26 = arith.constant 0 : index
      %43 = vector.load %arg10[%c0_25, %c0_26] : memref<16x128xf32, #tpu.memory_space<vmem>>, vector<16x128xf32>
      tpu.vector_store %arg10[%c0_25, %c0_26], %42 {strides = array<i32>} : memref<16x128xf32, #tpu.memory_space<vmem>>, vector<16x128xf32>,
      %c0_27 = arith.constant 0 : index
      %c0_28 = arith.constant 0 : index
      %44 = vector.load %arg6[%c0_27, %c0_28] : memref<1x128xf32, #tpu.memory_space<vmem>>, vector<1x128xf32>
      %45 = vector.broadcast %44 : vector<1x128xf32> to vector<16x128xf32>
      %46 = arith.addf %19, %45 : vector<16x128xf32>
      %c0_29 = arith.constant 0 : index
      %c0_30 = arith.constant 0 : index
      %47 = vector.load %arg11[%c0_29, %c0_30] : memref<16x128xf32, #tpu.memory_space<vmem>>, vector<16x128xf32>
      tpu.vector_store %arg11[%c0_29, %c0_30], %46 {strides = array<i32>} : memref<16x128xf32, #tpu.memory_space<vmem>>, vector<16x128xf32>,
    } else {
    }
    %c0 = arith.constant 0 : index
    %c0_1 = arith.constant 0 : index
    %3 = vector.load %arg10[%c0, %c0_1] : memref<16x128xf32, #tpu.memory_space<vmem>>, vector<16x128xf32>
    %c0_2 = arith.constant 0 : index
    %c0_3 = arith.constant 0 : index
    %4 = vector.load %arg3[%c0_2, %c0_3] : memref<128x256xf32, #tpu.memory_space<vmem>>, vector<128x256xf32>
    %cst = arith.constant dense<0.000000e+00> : vector<16x256xf32>
    %5 = tpu.matmul %3, %4, %cst {dimension_numbers = #tpu.dot_dimension_numbers<[1], [0], [0], [1], [0, 0, 1, 1], [], []>} : vector<16x128xf32>, vector<128x256xf32>, vector<16x256xf32> -> vector<16x256xf32>
    %c0_4 = arith.constant 0 : index
    %c0_5 = arith.constant 0 : index
    %6 = vector.load %arg4[%c0_4, %c0_5] : memref<1x256xf32, #tpu.memory_space<vmem>>, vector<1x256xf32>
    %7 = vector.broadcast %6 : vector<1x256xf32> to vector<16x256xf32>
    %8 = arith.addf %5, %7 : vector<16x256xf32>
    %cst_6 = arith.constant 0.000000e+00 : f32
    %9 = vector.broadcast %cst_6 : f32 to vector<16x256xf32>
    %10 = arith.maximumf %8, %9 : vector<16x256xf32>
    %c0_7 = arith.constant 0 : index
    %c0_8 = arith.constant 0 : index
    %11 = vector.load %arg11[%c0_7, %c0_8] : memref<16x128xf32, #tpu.memory_space<vmem>>, vector<16x128xf32>
    %c0_9 = arith.constant 0 : index
    %c0_10 = arith.constant 0 : index
    %12 = vector.load %arg5[%c0_9, %c0_10] : memref<256x128xf32, #tpu.memory_space<vmem>>, vector<256x128xf32>
    %cst_11 = arith.constant dense<0.000000e+00> : vector<16x128xf32>
    %13 = tpu.matmul %10, %12, %cst_11 {dimension_numbers = #tpu.dot_dimension_numbers<[1], [0], [0], [1], [0, 0, 1, 1], [], []>} : vector<16x256xf32>, vector<256x128xf32>, vector<16x128xf32> -> vector<16x128xf32>
    %14 = arith.addf %11, %13 : vector<16x128xf32>
    %c0_12 = arith.constant 0 : index
    %c0_13 = arith.constant 0 : index
    %15 = vector.load %arg11[%c0_12, %c0_13] : memref<16x128xf32, #tpu.memory_space<vmem>>, vector<16x128xf32>
    tpu.vector_store %arg11[%c0_12, %c0_13], %14 {strides = array<i32>} : memref<16x128xf32, #tpu.memory_space<vmem>>, vector<16x128xf32>,
    %c0_i32_14 = arith.constant 0 : i32
    %16 = arith.cmpi eq, %arg1, %c0_i32_14 : i32
    %17 = arith.extui %16 : i1 to i32
    %c0_i32_15 = arith.constant 0 : i32
    %18 = arith.cmpi ne, %17, %c0_i32_15 : i32
    scf.if %18 {
      %c0_16 = arith.constant 0 : index
      %c0_17 = arith.constant 0 : index
      %19 = vector.load %arg11[%c0_16, %c0_17] : memref<16x128xf32, #tpu.memory_space<vmem>>, vector<16x128xf32>
      %c0_18 = arith.constant 0 : index
      %c0_19 = arith.constant 0 : index
      %20 = vector.load %arg9[%c0_18, %c0_19] : memref<16x128xf32, #tpu.memory_space<vmem>>, vector<16x128xf32>
      tpu.vector_store %arg9[%c0_18, %c0_19], %19 {strides = array<i32>} : memref<16x128xf32, #tpu.memory_space<vmem>>, vector<16x128xf32>,
    } else {
    }
    return
  }
  func.func @transform_0(%arg0: i32, %arg1: i32) -> (i32, i32) {
    %c0_i32 = arith.constant 0 : i32
    %c0_i32_0 = arith.constant 0 : i32
    return %arg0, %c0_i32 : i32, i32
  }
  func.func @transform_1(%arg0: i32, %arg1: i32) -> (i32, i32) {
    %c0_i32 = arith.constant 0 : i32
    %c0_i32_0 = arith.constant 0 : i32
    return %c0_i32, %arg1 : i32, i32
  }
  func.func @transform_2(%arg0: i32, %arg1: i32) -> (i32, i32) {
    %c0_i32 = arith.constant 0 : i32
    %c0_i32_0 = arith.constant 0 : i32
    return %c0_i32, %arg1 : i32, i32
  }
  func.func @transform_3(%arg0: i32, %arg1: i32) -> (i32, i32) {
    %c0_i32 = arith.constant 0 : i32
    %c0_i32_0 = arith.constant 0 : i32
    return %arg1, %c0_i32 : i32, i32
  }
  func.func @transform_4(%arg0: i32, %arg1: i32) -> (i32, i32) {
    %c0_i32 = arith.constant 0 : i32
    %c0_i32_0 = arith.constant 0 : i32
    %c0_i32_1 = arith.constant 0 : i32
    return %c0_i32, %c0_i32_0 : i32, i32
  }
  func.func @transform_5(%arg0: i32, %arg1: i32) -> i32 {
    %c0_i32 = arith.constant 0 : i32
    %c0_i32_0 = arith.constant 0 : i32
    return %c0_i32 : i32
  }
  func.func @transform_6(%arg0: i32, %arg1: i32) -> i32 {
    %c0_i32 = arith.constant 0 : i32
    %c0_i32_0 = arith.constant 0 : i32
    return %c0_i32 : i32
  }
  func.func @transform_7(%arg0: i32, %arg1: i32) -> (i32, i32) {
    %c0_i32 = arith.constant 0 : i32
    %c0_i32_0 = arith.constant 0 : i32
    return %arg0, %c0_i32 : i32, i32
  }
}

</mosaic_0001>

<bundles_post_ra>
// kernel: residual_connection_ffn.1
= control target key start
LH: loop header
LB: loop body
LE: loop exit
PB: predicated region body
PF: predicated region fallthrough
CT: control target
= control target key end

     0   :  { %14 = vsyncpa [#allocation7], 0  ;;  %s622_s0 = inlined_call_operand.hbm [shape: f32[16,128], index: 0, kind: input, shape index: {}]   ;;  %s623_s1 = inlined_call_operand.hbm [shape: f32[128,256], index: 1, kind: input, shape index: {}]   ;;  %s624_s2 = inlined_call_operand.vmem [shape: f32[1,256], index: 2, kind: input, shape index: {}]   ;;  %s625_s3 = inlined_call_operand.hbm [shape: f32[256,128], index: 3, kind: input, shape index: {}]   ;;  %s626_s4 = inlined_call_operand.vmem [shape: f32[1,128], index: 4, kind: input, shape index: {}]   ;;  %s627_s5 = inlined_call_operand.<no memory space> [shape: f32[1], index: 5, kind: input, shape index: {}]   ;;  %s628_s6 = inlined_call_operand.<no memory space> [shape: f32[1], index: 6, kind: input, shape index: {}]   ;;  %s629_s7 = inlined_call_operand.hbm [shape: f32[16,128], index: 7, kind: output, shape index: {}]  }
   0x1   :  { %15 = vsyncpa [#allocation10], 0  ;;  %s34_s26 = sshll.u32 %s623_s1, 4  ;;  %s35_s26 = int_to_ptr.hbm [resolvable:$true] %s34_s26 }
   0x2   :  { %16 = vsyncpa [#allocation8], 0  ;;  %s512_s27 = smov [#allocation9]   ;;  %s21_s8 = sshll.u32 %s622_s0, 4  ;;  %s22_s8 = int_to_ptr.hbm [resolvable:$true] %s21_s8 }
   0x3   :  { %s36_s28 = sshll.u32 %s512_s27, 4  ;;  %s513_s9 = smov 256   ;;  %s37_s28 = int_to_ptr.vmem [resolvable:$true] %s36_s28 }
   0x4   :  { %s514_s10 = smov 16   ;;  %s515_s11 = smov [#allocation6]  }
   0x5   :  { %42 = dma.hbm_to_vmem [thread:$0]  %s35_s26, 4096, %s37_s28, [#allocation10], %s513_s9, %s513_s9, %s514_s10  }
   0x6   :  { %s23_s12 = sshll.u32 %s515_s11, 4  ;;  %s516_s13 = smov 128   ;;  %s24_s12 = int_to_ptr.vmem [resolvable:$true] %s23_s12 }
   0x7   :  { %s517_s14 = smov 8   ;;  %s49_s16 = sshll.u32 %s625_s3, 4  ;;  %s50_s16 = int_to_ptr.hbm [resolvable:$true] %s49_s16 }
   0x8   :  { %29 = dma.hbm_to_vmem [thread:$0]  %s22_s8, 256, %s24_s12, [#allocation7], %s516_s13, %s516_s13, %s517_s14  }
   0x9   :  { %s518_s17 = smov [#allocation11]  }
   0xa   :  { %s51_s0 = sshll.u32 %s518_s17, 4  ;;  %s52_s0 = int_to_ptr.vmem [resolvable:$true] %s51_s0 }
   0xb   :  { %57 = dma.hbm_to_vmem [thread:$0]  %s50_s16, 4096, %s52_s0, [#allocation10], %s516_s13, %s516_s13, %s517_s14  }
   0xc   :  { %506 = dma.done.wait [#allocation7], 256  }
   0xd   :  { %507 = vsyncadd [#allocation7], 4294967040 }
   0xe   :  { %508 = dma.done.wait [#allocation10], 8192  }
   0xf   :  { %509 = vsyncadd [#allocation10], 4294959104  ;;  %v577_v0 = vld [vmem:[#allocation6] sm:$0xff]  ;;  %v580_v1 = vld [vmem:[#allocation6 + $0x8] sm:$0xff]  ;;  %v519_v2 = vmov 128.0   ;;  %v520_v17 = vmov 127.0  }
  0x10   :  { %82 = vadd.xlane.f32.xlu0 %v577_v0  ;;  %398 = vrcp.f32 %v519_v2  ;;  %v218_v20 = vld [vmem:[#allocation9 + $0xf0] sm:$0xff]  ;;  %v219_v21 = vld [vmem:[#allocation9 + $0xf8] sm:$0xff]  ;;  %v216_v22 = vld [vmem:[#allocation9 + $0xe0] sm:$0xff]  ;;  %s521_s22 = smov [#allocation12]   ;;  %s373_s26 = sshll.u32 %s629_s7, 4  ;;  %s374_s26 = int_to_ptr.hbm [resolvable:$true] %s373_s26 }
  0x11   :  { %400 = vrcp.f32 %v520_v17  ;;  %226 = vmatpush.msra.mxu0 %v218_v20  ;;  %249 = vmatpush.msra.mxu1 %v219_v21  ;;  %v217_v23 = vld [vmem:[#allocation9 + $0xe8] sm:$0xff]  ;;  %v214_v25 = vld [vmem:[#allocation9 + $0xd0] sm:$0xff]  ;;  %v215_v26 = vld [vmem:[#allocation9 + $0xd8] sm:$0xff]  ;;  %s371_s23 = sshll.u32 %s521_s22, 4  ;;  %s372_s23 = int_to_ptr.vmem [resolvable:$true] %s371_s23 }
  0x12   :  { %v212_v27 = vld [vmem:[#allocation9 + $0xc0] sm:$0xff]  ;;  %v213_v28 = vld [vmem:[#allocation9 + $0xc8] sm:$0xff]  ;;  %v210_v30 = vld [vmem:[#allocation9 + $0xb0] sm:$0xff] }
  0x13   :  { %227 = vmatpush.msra.mxu0 %v216_v22  ;;  %250 = vmatpush.msra.mxu1 %v217_v23  ;;  %v211_v31 = vld [vmem:[#allocation9 + $0xb8] sm:$0xff]  ;;  %v208_v32 = vld [vmem:[#allocation9 + $0xa0] sm:$0xff]  ;;  %v209_v33 = vld [vmem:[#allocation9 + $0xa8] sm:$0xff] }
  0x14   :  { %v206_v35 = vld [vmem:[#allocation9 + $0x90] sm:$0xff]  ;;  %v207_v36 = vld [vmem:[#allocation9 + $0x98] sm:$0xff]  ;;  %v204_v37 = vld [vmem:[#allocation9 + $0x80] sm:$0xff] }
  0x15   :  { %228 = vmatpush.msra.mxu0 %v214_v25  ;;  %251 = vmatpush.msra.mxu1 %v215_v26  ;;  %v205_v38 = vld [vmem:[#allocation9 + $0x88] sm:$0xff]  ;;  %v202_v39 = vld [vmem:[#allocation9 + $0x70] sm:$0xff]  ;;  %v203_v40 = vld [vmem:[#allocation9 + $0x78] sm:$0xff] }
  0x16   :  { %v399_v3 = vpop.eup %398  ;;  %v200_v42 = vld [vmem:[#allocation9 + $0x60] sm:$0xff]  ;;  %v201_v43 = vld [vmem:[#allocation9 + $0x68] sm:$0xff]  ;;  %v198_v46 = vld [vmem:[#allocation9 + $0x50] sm:$0xff] }
  0x17   :  { %v87_v4 = vmul.f32 128.0, %v399_v3  ;;  %vm91_vm0 = vweird.f32 %v399_v3  ;;  %v401_v18 = vpop.eup %400  ;;  %229 = vmatpush.msra.mxu0 %v212_v27  ;;  %252 = vmatpush.msra.mxu1 %v213_v28  ;;  %v199_v47 = vld [vmem:[#allocation9 + $0x58] sm:$0xff]  ;;  %v196_v48 = vld [vmem:[#allocation9 + $0x40] sm:$0xff]  ;;  %v197_v49 = vld [vmem:[#allocation9 + $0x48] sm:$0xff] }
  0x18   :  { %84 = vadd.xlane.f32.xlu0 %v580_v1  ;;  %v104_v19 = vmul.f32 127.0, %v401_v18  ;;  %vm108_vm1 = vweird.f32 %v401_v18  ;;  %v194_v50 = vld [vmem:[#allocation9 + $0x30] sm:$0xff]  ;;  %v195_v51 = vld [vmem:[#allocation9 + $0x38] sm:$0xff]  ;;  %v192_v52 = vld [vmem:[#allocation9 + $0x20] sm:$0xff] }
  0x19   :  { %v88_v5 = vsub.f32 1.0, %v87_v4  ;;  %230 = vmatpush.msra.mxu0 %v210_v30  ;;  %253 = vmatpush.msra.mxu1 %v211_v31  ;;  %v193_v53 = vld [vmem:[#allocation9 + $0x28] sm:$0xff]  ;;  %v190_v57 = vld [vmem:[#allocation9 + $0x10] sm:$0xff]  ;;  %v191_v58 = vld [vmem:[#allocation9 + $0x18] sm:$0xff] }
  0x1a   :  { %v105_v24 = vsub.f32 1.0, %v104_v19  ;;  %v188_v60 = vld [vmem:[#allocation9] sm:$0xff]  ;;  %v189_v61 = vld [vmem:[#allocation9 + $0x8] sm:$0xff]  ;;  %v308_v19 = vld [vmem:[#allocation11 + $0xf0] sm:$0xff] }
  0x1b   :  { %v89_v6 = vmul.f32 %v399_v3, %v88_v5  ;;  %231 = vmatpush.msra.mxu0 %v208_v32  ;;  %254 = vmatpush.msra.mxu1 %v209_v33  ;;  %v291_v20 = vld [vmem:[#allocation11 + $0x68] sm:$0xff]  ;;  %v290_v23 = vld [vmem:[#allocation11 + $0x60] sm:$0xff]  ;;  %v289_v27 = vld [vmem:[#allocation11 + $0x58] sm:$0xff] }
  0x1c   :  { %v106_v29 = vmul.f32 %v401_v18, %v105_v24  ;;  %v307_v21 = vld [vmem:[#allocation11 + $0xe8] sm:$0xff]  ;;  %v306_v24 = vld [vmem:[#allocation11 + $0xe0] sm:$0xff]  ;;  %v305_v28 = vld [vmem:[#allocation11 + $0xd8] sm:$0xff] }
  0x1d   :  { %v90_v7 = vadd.f32 %v399_v3, %v89_v6  ;;  %232 = vmatpush.msra.mxu0 %v206_v35  ;;  %255 = vmatpush.msra.mxu1 %v207_v36  ;;  %v288_v31 = vld [vmem:[#allocation11 + $0x50] sm:$0xff]  ;;  %v287_v36 = vld [vmem:[#allocation11 + $0x48] sm:$0xff] }
  0x1e   :  { %v107_v34 = vadd.f32 %v401_v18, %v106_v29  ;;  %v304_v32 = vld [vmem:[#allocation11 + $0xd0] sm:$0xff] }
  0x1f   :  { %v92_v8 = vsel %vm91_vm0, %v399_v3, %v90_v7  ;;  %233 = vmatpush.msra.mxu0 %v204_v37  ;;  %256 = vmatpush.msra.mxu1 %v205_v38  ;;  %v303_v37 = vld [vmem:[#allocation11 + $0xc8] sm:$0xff] }
  0x20   :  { %v109_v41 = vsel %vm108_vm1, %v401_v18, %v107_v34 }
  0x21   :  { %234 = vmatpush.msra.mxu0 %v202_v39  ;;  %257 = vmatpush.msra.mxu1 %v203_v40  ;;  %v286_v39 = vld [vmem:[#allocation11 + $0x40] sm:$0xff] }
  0x22   :  { %v302_v40 = vld [vmem:[#allocation11 + $0xc0] sm:$0xff] }
  0x23   :  { %235 = vmatpush.msra.mxu0 %v200_v42  ;;  %258 = vmatpush.msra.mxu1 %v201_v43 }
  0x25   :  { %236 = vmatpush.msra.mxu0 %v198_v46  ;;  %259 = vmatpush.msra.mxu1 %v199_v47  ;;  %v167_v46 = vstv %s627_s5 }
  0x27   :  { %237 = vmatpush.msra.mxu0 %v196_v48  ;;  %260 = vmatpush.msra.mxu1 %v197_v49  ;;  %v284_v48 = vld [vmem:[#allocation11 + $0x30] sm:$0xff] }
  0x28   :  { %v300_v49 = vld [vmem:[#allocation11 + $0xb0] sm:$0xff] }
  0x29   :  { %238 = vmatpush.msra.mxu0 %v194_v50  ;;  %261 = vmatpush.msra.mxu1 %v195_v51 }
  0x2b   :  { %239 = vmatpush.msra.mxu0 %v192_v52  ;;  %262 = vmatpush.msra.mxu1 %v193_v53 }
  0x2d   :  { %240 = vmatpush.msra.mxu0 %v190_v57  ;;  %263 = vmatpush.msra.mxu1 %v191_v58  ;;  %v173_v58 = vstv %s628_s6 }
  0x2f   :  { %241 = vmatpush.msra.mxu0 %v188_v60  ;;  %264 = vmatpush.msra.mxu1 %v189_v61  ;;  %v282_v61 = vld [vmem:[#allocation11 + $0x20] sm:$0xff] }
  0x83   :  { %v83_v9 = vpop.xlane.xlu0 %82 }
  0x84   :  { %v93_v10 = vmul.f32 %v92_v8, %v83_v9 }
  0x86   :  { %v584_v11 = vsub.f32 %v577_v0, %v93_v10 }
  0x88   :  { %v97_v12 = vmul.f32 %v584_v11, %v584_v11  ;;  %v168_v52 = vmul.f32 %v167_v46, %v584_v11 }
  0x8a   :  { %99 = vadd.xlane.f32.xlu1 %v97_v12 }
  0x8b   :  { %v85_v13 = vpop.xlane.xlu0 %84 }
  0x8c   :  { %v94_v14 = vmul.f32 %v92_v8, %v85_v13  ;;  %v293_v13 = vld [vmem:[#allocation11 + $0x78] sm:$0xff] }
  0x8d   :  { %310 = vmatpush.msra.mxu2 %v293_v13 }
  0x8e   :  { %v589_v15 = vsub.f32 %v580_v1, %v94_v14  ;;  %v309_v14 = vld [vmem:[#allocation11 + $0xf8] sm:$0xff] }
  0x8f   :  { %333 = vmatpush.msra.mxu3 %v309_v14  ;;  %v280_v14 = vld [vmem:[#allocation11 + $0x10] sm:$0xff] }
  0x90   :  { %v98_v16 = vmul.f32 %v589_v15, %v589_v15 }
  0x91   :  { %334 = vmatpush.msra.mxu3 %v308_v19  ;;  %v278_v19 = vld [vmem:[#allocation11] sm:$0xff] }
  0x92   :  { %101 = vadd.xlane.f32.xlu1 %v98_v16  ;;  %v292_v16 = vld [vmem:[#allocation11 + $0x70] sm:$0xff] }
  0x93   :  { %311 = vmatpush.msra.mxu2 %v292_v16  ;;  %335 = vmatpush.msra.mxu3 %v307_v21  ;;  %v296_v16 = vld [vmem:[#allocation11 + $0x90] sm:$0xff] }
  0x95   :  { %312 = vmatpush.msra.mxu2 %v291_v20  ;;  %336 = vmatpush.msra.mxu3 %v306_v24  ;;  %v294_v20 = vld [vmem:[#allocation11 + $0x80] sm:$0xff] }
  0x97   :  { %313 = vmatpush.msra.mxu2 %v290_v23  ;;  %337 = vmatpush.msra.mxu3 %v305_v28 }
  0x99   :  { %314 = vmatpush.msra.mxu2 %v289_v27  ;;  %338 = vmatpush.msra.mxu3 %v304_v32 }
  0x9b   :  { %315 = vmatpush.msra.mxu2 %v288_v31  ;;  %339 = vmatpush.msra.mxu3 %v303_v37 }
  0x9d   :  { %316 = vmatpush.msra.mxu2 %v287_v36  ;;  %340 = vmatpush.msra.mxu3 %v302_v40 }
  0x9f   :  { %317 = vmatpush.msra.mxu2 %v286_v39 }
  0xfd   :  { %v100_v44 = vpop.xlane.xlu1 %99 }
  0xfe   :  { %v110_v45 = vmul.f32 %v109_v41, %v100_v44  ;;  %v285_v44 = vld [vmem:[#allocation11 + $0x38] sm:$0xff] }
  0xff   :  { %318 = vmatpush.msra.mxu2 %v285_v44 }
 0x100   :  { %402 = vrsqrt.f32 %v110_v45  ;;  %vm119_vm2 = vcmp.eq.f32.partialorder %v110_v45, inf  ;;  %v122_v8 = vand.u32 2147483648, %v110_v45  ;;  %vm121_vm3 = vcmp.eq.f32.partialorder %v110_v45, 0.0 }
 0x101   :  { %319 = vmatpush.msra.mxu2 %v284_v48 }
 0x105   :  { %v102_v54 = vpop.xlane.xlu1 %101 }
 0x106   :  { %v403_v55 = vpop.eup %402  ;;  %v111_v56 = vmul.f32 %v109_v41, %v102_v54 }
 0x107   :  { %v113_v59 = vmul.f32 %v403_v55, %v110_v45 }
 0x108   :  { %404 = vrsqrt.f32 %v111_v56  ;;  %vm131_vm4 = vcmp.eq.f32.partialorder %v111_v56, inf  ;;  %v134_v26 = vand.u32 2147483648, %v111_v56  ;;  %vm133_vm5 = vcmp.eq.f32.partialorder %v111_v56, 0.0 }
 0x109   :  { %v114_v62 = vmul.f32 %v403_v55, %v113_v59 }
 0x10b   :  { %v115_v63 = vmul.f32 0.5, %v114_v62  ;;  %v298_v62 = vld [vmem:[#allocation11 + $0xa0] sm:$0xff] }
 0x10d   :  { %v116_v2 = vsub.f32 1.5, %v115_v63 }
 0x10e   :  { %v405_v3 = vpop.eup %404 }
 0x10f   :  { %v117_v4 = vmul.f32 %v403_v55, %v116_v2  ;;  %v125_v5 = vmul.f32 %v405_v3, %v111_v56  ;;  %v283_v55 = vld [vmem:[#allocation11 + $0x28] sm:$0xff] }
 0x110   :  { %320 = vmatpush.msra.mxu2 %v283_v55 }
 0x111   :  { %v118_v6 = vmul.f32 %v117_v4, %v110_v45  ;;  %v126_v7 = vmul.f32 %v405_v3, %v125_v5  ;;  %v281_v4 = vld [vmem:[#allocation11 + $0x18] sm:$0xff] }
 0x112   :  { %v297_v5 = vld [vmem:[#allocation11 + $0x98] sm:$0xff]  ;;  %321 = vmatpush.msra.mxu2 %v282_v61 }
 0x113   :  { %v127_v9 = vmul.f32 0.5, %v126_v7  ;;  %v120_v10 = vsel %vm119_vm2, %v110_v45, %v118_v6  ;;  %v301_v45 = vld [vmem:[#allocation11 + $0xb8] sm:$0xff] }
 0x114   :  { %v123_v12 = vsel %vm121_vm3, %v122_v8, %v120_v10  ;;  %341 = vmatpush.msra.mxu3 %v301_v45  ;;  %322 = vmatpush.msra.mxu2 %v281_v4  ;;  %v169_v8 = vmul.f32 %v167_v46, %v589_v15  ;;  %v220_v15 = vld [vmem:[%s624_s2] sm:$0x3] }
 0x115   :  { %v128_v17 = vsub.f32 1.5, %v127_v9  ;;  %v136_v18 = vadd.f32 1e-06, %v123_v12  ;;  %v222_v21 = vperm.slane %v220_v15, 0 }
 0x116   :  { %342 = vmatpush.msra.mxu3 %v300_v49  ;;  %323 = vmatpush.msra.mxu2 %v280_v14 }
 0x117   :  { %v129_v22 = vmul.f32 %v405_v3, %v128_v17  ;;  %406 = vrcp.f32 %v136_v18  ;;  %v149_v41 = vand.u32 2147483648, %v136_v18  ;;  %v147_v43 = vand.u32 2147483647, %v136_v18  ;;  %v279_v17 = vld [vmem:[#allocation11 + $0x8] sm:$0xff] }
 0x118   :  { %vm143_vm7 = vweird.f32 %v136_v18  ;;  %324 = vmatpush.msra.mxu2 %v279_v17 }
 0x119   :  { %v130_v25 = vmul.f32 %v129_v22, %v111_v56  ;;  %v150_v51 = vor.u32 1.1754944e-38, %v149_v41  ;;  %vm148_vm9 = vcmp.eq.f32.partialorder %v147_v43, 8.507059e+37  ;;  %v223_v22 = vperm.slane %v220_v15, 1 }
 0x11a   :  { %325 = vmatpush.msra.mxu2 %v278_v19 }
 0x11b   :  { %v132_v29 = vsel %vm131_vm4, %v111_v56, %v130_v25  ;;  %v299_v56 = vld [vmem:[#allocation11 + $0xa8] sm:$0xff] }
 0x11c   :  { %v135_v30 = vsel %vm133_vm5, %v134_v26, %v132_v29  ;;  %343 = vmatpush.msra.mxu3 %v299_v56 }
 0x11d   :  { %v407_v33 = vpop.eup %406  ;;  %v593_v34 = vadd.f32 1e-06, %v135_v30 }
 0x11e   :  { %v139_v35 = vmul.f32 %v407_v33, %v136_v18  ;;  %vm144_vm6 = vweird.f32 %v407_v33  ;;  %344 = vmatpush.msra.mxu3 %v298_v62  ;;  %v295_v18 = vld [vmem:[#allocation11 + $0x88] sm:$0xff] }
 0x11f   :  { %408 = vrcp.f32 %v593_v34  ;;  %vm145_vm8 = vmor %vm143_vm7, %vm144_vm6  ;;  %v163_v63 = vand.u32 2147483648, %v593_v34  ;;  %v161_v3 = vand.u32 2147483647, %v593_v34  ;;  %vm157_vm11 = vweird.f32 %v593_v34 }
 0x120   :  { %v140_v38 = vsub.f32 1.0, %v139_v35  ;;  %345 = vmatpush.msra.mxu3 %v297_v5  ;;  %v397_v35 = vld [vmem:[%s626_s4] ss:$0 sm:$0xff] }
 0x121   :  { %v164_v7 = vor.u32 1.1754944e-38, %v163_v63  ;;  %vm162_vm13 = vcmp.eq.f32.partialorder %v161_v3, 8.507059e+37  ;;  %v182_v36 = vadd.f32 %v397_v35, %v577_v0  ;;  %v183_v41 = vadd.f32 %v397_v35, %v580_v1 }
 0x122   :  { %v141_v42 = vmul.f32 %v407_v33, %v140_v38  ;;  %346 = vmatpush.msra.mxu3 %v296_v16 }
 0x124   :  { %v142_v47 = vadd.f32 %v407_v33, %v141_v42  ;;  %347 = vmatpush.msra.mxu3 %v295_v18 }
 0x125   :  { %v409_v50 = vpop.eup %408 }
 0x126   :  { %v146_v53 = vsel %vm145_vm8, %v407_v33, %v142_v47  ;;  %v153_v54 = vmul.f32 %v409_v50, %v593_v34  ;;  %vm158_vm10 = vweird.f32 %v409_v50  ;;  %348 = vmatpush.msra.mxu3 %v294_v20 }
 0x127   :  { %v151_v57 = vsel %vm148_vm9, %v150_v51, %v146_v53  ;;  %vm159_vm12 = vmor %vm157_vm11, %vm158_vm10 }
 0x128   :  { %v170_v59 = vmul.f32 %v168_v52, %v151_v57  ;;  %v154_v60 = vsub.f32 1.0, %v153_v54 }
 0x12a   :  { %v174_v11 = vadd.f32 %v173_v58, %v170_v59  ;;  %v155_v2 = vmul.f32 %v409_v50, %v154_v60 }
 0x12c   :  { %242 = vmatmul.f32.vlgmr.msra.gmra.mxu0 %v174_v11  ;;  %265 = vmatmul.f32.vlgmr.msra.gmra.mxu1 %v174_v11  ;;  %v156_v6 = vadd.f32 %v409_v50, %v155_v2 }
 0x12e   :  { %v160_v9 = vsel %vm159_vm12, %v409_v50, %v156_v6 }
 0x12f   :  { %v165_v10 = vsel %vm162_vm13, %v164_v7, %v160_v9 }
 0x130   :  { %v171_v12 = vmul.f32 %v169_v8, %v165_v10 }
 0x132   :  { %v175_v13 = vadd.f32 %v173_v58, %v171_v12 }
 0x134   :  { %245 = vmatmul.f32.gmra.mxu0 %v175_v13  ;;  %268 = vmatmul.f32.gmra.mxu1 %v175_v13 }
 0x1a9   :  { %v243_v23 = vpop.f32.mrf.mxu0  ;;  %v266_v24 = vpop.f32.mrf.mxu1 }
 0x1aa   :  { %v244_v25 = vadd.f32 %v243_v23, %v222_v21  ;;  %v267_v26 = vadd.f32 %v266_v24, %v223_v22 }
 0x1ac   :  { %v272_v27 = vmax.f32 %v244_v25, 0.0  ;;  %v273_v28 = vmax.f32 %v267_v26, 0.0 }
 0x1ae   :  { %326 = vmatmul.f32.vlgmr.msra.gmra.mxu2 %v272_v27  ;;  %349 = vmatmul.f32.vlgmr.msra.gmra.mxu3 %v273_v28 }
 0x1b1   :  { %v246_v29 = vpop.f32.mrf.mxu0  ;;  %v269_v30 = vpop.f32.mrf.mxu1 }
 0x1b2   :  { %v247_v31 = vadd.f32 %v246_v29, %v222_v21  ;;  %v270_v32 = vadd.f32 %v269_v30, %v223_v22 }
 0x1b4   :  { %v274_v33 = vmax.f32 %v247_v31, 0.0  ;;  %v275_v34 = vmax.f32 %v270_v32, 0.0 }
 0x1b6   :  { %329 = vmatmul.f32.gmra.mxu2 %v274_v33  ;;  %352 = vmatmul.f32.gmra.mxu3 %v275_v34 }
 0x231   :  { %v327_v37 = vpop.f32.mrf.mxu2  ;;  %v350_v38 = vpop.f32.mrf.mxu3 }
 0x232   :  { %v351_v39 = vadd.f32 %v350_v38, %v327_v37 }
 0x234   :  { %v356_v40 = vadd.f32 %v351_v39, %v182_v36 }
 0x236   :  { %365 = vst [vmem:[#allocation12] sm:$0xff] %v356_v40 }
 0x239   :  { %v330_v42 = vpop.f32.mrf.mxu2  ;;  %v353_v43 = vpop.f32.mrf.mxu3 }
 0x23a   :  { %v354_v44 = vadd.f32 %v353_v43, %v330_v42 }
 0x23c   :  { %v357_v45 = vadd.f32 %v354_v44, %v183_v41 }
 0x23e   :  { %366 = vst [vmem:[#allocation12 + $0x8] sm:$0xff] %v357_v45 }
 0x23f   :  { %379 = dma.vmem_to_hbm [thread:$0]  %s372_s23, 256, %s374_s26, [#allocation8], %s516_s13, %s516_s13, %s517_s14  }
 0x240   :  { %510 = dma.done.wait [#allocation8], 256  }
 0x241   :  { %511 = vsyncadd [#allocation8], 4294967040 }
 0x242   :  { %384 = vsyncpa [#allocation7], 1 }
 0x243   :  { %385 = vsyncpa [#allocation10], 1 }
 0x244   :  { %386 = vsyncpa [#allocation8], 1 }

</bundles_post_ra>
